<compile_context>
chip_gen: v5e
topology: v5e:2x2
jax: 0.10.0
libtpu: 0.0.40
codegen_flags: <defaults>
</compile_context>

<pallas_src>
import functools

import numpy as np
import jax
import jax.numpy as jnp
from jax.experimental import pallas as pl
from jax.experimental.pallas import tpu as pltpu

F_EMB = 32  # code_embedding_size == TGCNGraphConvolution.feature_size


# ------------------------------ Pallas kernel ------------------------------ #

def _tgcn_seq_kernel(codes_ref, emb_ref,
                     lr_ref, lr_ec_ref, lr_oc_ref,
                     lc_ref, lc_ec_ref, lc_oc_ref,
                     w1a_ref, w1b_ref, b1_ref,
                     w2a_ref, w2b_ref, b2_ref,
                     acc_ref, h_ref):
    """One fused TGCN cell step; grid axis is the sequence (state in VMEM)."""
    t = pl.program_id(0)
    H = w2b_ref.shape[0]          # hidden dim
    BN2 = h_ref.shape[0]          # B * N / 2

    @pl.when(t == 0)
    def _init():
        h_ref[...] = jnp.zeros_like(h_ref)
        acc_ref[...] = jnp.zeros_like(acc_ref)

    dot = functools.partial(jnp.dot, preferred_element_type=jnp.float32)

    # Embedding multiply in-kernel: (B*N, 1) codes * (B*N, F) tiled table.
    x = codes_ref[...] * emb_ref[...]                                # (BN, F)

    # Hidden state in "paired" layout: row (b*N/2 + i) = [h[b,2i,:], h[b,2i+1,:]],
    # i.e. exactly the flat row-major hidden vector the reference gates against.
    hL = h_ref[:, :H]
    hR = h_ref[:, H:]

    # graph_conv1 with host-permuted rows (r-rows first, u-rows last):
    #   ru = sigmoid( Lr @ ([x | h] @ W1) + b1 )
    # where Lr @ h_node = Lr_evencols @ hL + Lr_oddcols @ hR.
    lh1 = dot(lr_ec_ref[...], hL) + dot(lr_oc_ref[...], hR)          # (BN, H)
    ru = jax.nn.sigmoid(dot(dot(lr_ref[...], x), w1a_ref[...]) +
                        dot(lh1, w1b_ref[...]) + b1_ref[...])        # (BN, 2H)
    r = ru[:BN2]                   # flat-aligned with h_p (paired layout)
    u = ru[BN2:]

    rhL = r[:, :H] * hL            # == r_flat * h_flat  (reference gating)
    rhR = r[:, H:] * hR

    # graph_conv2 with host-permuted rows (even node rows first, odd rows last):
    #   c = tanh( Lc @ ([x | r*h] @ W2) + b2 )
    lh2 = dot(lc_ec_ref[...], rhL) + dot(lc_oc_ref[...], rhR)        # (BN, H)
    c2 = jnp.tanh(dot(dot(lc_ref[...], x), w2a_ref[...]) +
                  dot(lh2, w2b_ref[...]) + b2_ref[...])              # (BN, H)
    cL = c2[:BN2]                  # even node rows -> paired left half
    cR = c2[BN2:]                  # odd  node rows -> paired right half

    # GRU-style update, fully in the flat-aligned paired layout.
    new_hL = u[:, :H] * hL + (1.0 - u[:, :H]) * cL
    new_hR = u[:, H:] * hR + (1.0 - u[:, H:]) * cR

    h_ref[:, :H] = new_hL
    h_ref[:, H:] = new_hR
    acc_ref[:, :H] += new_hL       # running sum over the sequence
    acc_ref[:, H:] += new_hR


# ------------------------------- model glue -------------------------------- #

def laplacian_with_self_loop(adj):
    # calculate_laplacian_with_self_loop: D^{-1/2} (A + I) D^{-1/2}
    m = adj + jnp.eye(adj.shape[0], dtype=adj.dtype)
    row_sum = m.sum(axis=1)
    safe = jnp.where(row_sum > 0, row_sum, 1.0)
    d_inv_sqrt = jnp.where(row_sum > 0, safe ** -0.5, 0.0)
    d_mat = jnp.diag(d_inv_sqrt)
    return (m @ d_mat).T @ d_mat


def _build_permuted_laplacians(lap, B, N):
    """Block-diagonal Laplacian copies with the flat-chunk layout baked in.

    lr : rows reordered so the first B*N/2 rows produce the r-chunk and the
         last B*N/2 rows produce the u-chunk of sigmoid(gc1) per batch.
    lc : rows reordered so the first half produces even node rows and the
         second half odd node rows of gc2 (the paired-layout halves of c).
    *_ec / *_oc : even / odd column splits, used to multiply the paired-layout
         hidden state as if it were in node layout (L @ h = L_ec@hL + L_oc@hR).
    """
    N2 = N // 2
    lb = jnp.kron(jnp.eye(B, dtype=lap.dtype), lap)                  # (BN, BN)
    r_rows = np.concatenate([b * N + np.arange(N2) for b in range(B)])
    u_rows = np.concatenate([b * N + N2 + np.arange(N2) for b in range(B)])
    e_rows = np.concatenate([b * N + np.arange(0, N, 2) for b in range(B)])
    o_rows = np.concatenate([b * N + np.arange(1, N, 2) for b in range(B)])
    lr = lb[np.concatenate([r_rows, u_rows])]
    lc = lb[np.concatenate([e_rows, o_rows])]
    return (lr, lr[:, 0::2], lr[:, 1::2],
            lc, lc[:, 0::2], lc[:, 1::2])


def tgcn_forward(params, lap, inputs, visit_lens):
    # inputs: (B, seq, N) integer multi-hot codes; visit_lens is unused
    # (matches the reference, which never reads it in forward()).
    del visit_lens
    B, S, N = inputs.shape
    H = params["w2b"].shape[0]
    assert N % 2 == 0, "flat-chunk layout trick requires an even node count"
    BN, BN2 = B * N, B * N // 2

    lr, lr_ec, lr_oc, lc, lc_ec, lc_oc = _build_permuted_laplacians(lap, B, N)
    emb_tiled = jnp.tile(params["embedding"], (B, 1))                # (BN, F)
    # (S, B*N, 1) float code column; the embedding multiply runs in-kernel.
    codes = jnp.transpose(inputs, (1, 0, 2)).astype(jnp.float32).reshape(S, BN, 1)

    const2 = lambda t: (0, 0)
    acc = pl.pallas_call(
        _tgcn_seq_kernel,
        out_shape=jax.ShapeDtypeStruct((BN2, 2 * H), jnp.float32),
        grid=(S,),
        in_specs=[
            pl.BlockSpec((None, BN, 1), lambda t: (t, 0, 0)),        # codes_t
            pl.BlockSpec((BN, F_EMB), const2),                       # emb_tiled
            pl.BlockSpec((BN, BN), const2),                          # lr
            pl.BlockSpec((BN, BN2), const2),                         # lr even cols
            pl.BlockSpec((BN, BN2), const2),                         # lr odd cols
            pl.BlockSpec((BN, BN), const2),                          # lc
            pl.BlockSpec((BN, BN2), const2),                         # lc even cols
            pl.BlockSpec((BN, BN2), const2),                         # lc odd cols
            pl.BlockSpec((F_EMB, 2 * H), const2),                    # w1a
            pl.BlockSpec((H, 2 * H), const2),                        # w1b
            pl.BlockSpec((1, 2 * H), const2),                        # b1
            pl.BlockSpec((F_EMB, H), const2),                        # w2a
            pl.BlockSpec((H, H), const2),                            # w2b
            pl.BlockSpec((1, H), const2),                            # b2
        ],
        out_specs=pl.BlockSpec((BN2, 2 * H), const2),                # lane-dense
        scratch_shapes=[pltpu.VMEM((BN2, 2 * H), jnp.float32)],      # hidden state
        compiler_params=pltpu.CompilerParams(
            dimension_semantics=("arbitrary",)),
    )(codes, emb_tiled, lr, lr_ec, lr_oc, lc, lc_ec, lc_oc,
      params["w1a"], params["w1b"], params["b1"],
      params["w2a"], params["w2b"], params["b2"])

    # acc = sum over seq of paired-layout hidden states -> mean over seq & nodes.
    feat = acc.reshape(B, N // 2, 2, H).sum(axis=(1, 2)) / (S * N)   # (B, H)

    # nn.Dropout(0.1) is identity at inference; Linear(64,1) + Sigmoid epilogue
    # is a micro-matmul left in plain JAX.
    logits = feat @ params["wp"].T + params["bp"]
    return jax.nn.sigmoid(logits)                                    # (B, 1)


# --------------------- pure-JAX reference (self-check) ---------------------- #

def _tgcn_reference(params, lap, inputs):
    """Straight-line JAX port of the PyTorch forward, for numerical checking."""
    B, S, N = inputs.shape
    H = params["w2b"].shape[0]
    emb = inputs[..., None].astype(jnp.float32) * params["embedding"]  # (B,S,N,F)
    xs = jnp.transpose(emb, (1, 0, 2, 3))                              # (S,B,N,F)
    h0 = jnp.zeros((B, N, H), jnp.float32)

    def gconv(x, hid, wa, wb, b):
        m = x @ wa + hid @ wb                         # [x | h] @ W
        return jnp.einsum("nm,bmo->bno", lap, m) + b  # L @ ...

    def step(h, x_t):
        conc = jax.nn.sigmoid(
            gconv(x_t, h, params["w1a"], params["w1b"], params["b1"]))
        cf = conc.reshape(B, N * 2 * H)               # flat torch.chunk(dim=1)
        r, u = cf[:, : N * H], cf[:, N * H:]
        rh = (r * h.reshape(B, N * H)).reshape(B, N, H)
        c = jnp.tanh(
            gconv(x_t, rh, params["w2a"], params["w2b"], params["b2"]))
        new_h = (u * h.reshape(B, N * H)
                 + (1.0 - u) * c.reshape(B, N * H)).reshape(B, N, H)
        return new_h, new_h

    _, ys = jax.lax.scan(step, h0, xs)
    feat = ys.mean(axis=(0, 2))                       # mean over seq then nodes
    return jax.nn.sigmoid(feat @ params["wp"].T + params["bp"])


# ---------------------------------- main ----------------------------------- #

if __name__ == "__main__":
    key = jax.random.PRNGKey(0)
    # hidden_dim must be 64 for the module's hard-coded nn.Linear(64, 1) to be
    # shape-consistent with the forward pass.
    B, S, N, H = 2, 4, 16, 64
    ks = jax.random.split(key, 8)

    # Deterministic symmetric 0/1 adjacency, then normalized laplacian buffer.
    a = jax.random.uniform(ks[0], (N, N), jnp.float32)
    adj = ((a + a.T) > 1.0).astype(jnp.float32)
    lap = laplacian_with_self_loop(adj)

    def xavier_uniform(k, shape):
        bound = (6.0 / (shape[0] + shape[1])) ** 0.5
        return jax.random.uniform(k, shape, jnp.float32, -bound, bound)

    # TGCNGraphConvolution weights are (num_gru_units + feature_size, out); the
    # concat order in forward is [features (32) | hidden (H)], so rows [:32]
    # act on features and rows [32:] on the hidden state.
    w1 = xavier_uniform(ks[1], (H + F_EMB, 2 * H))   # graph_conv1, bias init 1.0
    w2 = xavier_uniform(ks[2], (H + F_EMB, H))       # graph_conv2, bias init 0.0
    params = dict(
        embedding=xavier_uniform(ks[3], (N, F_EMB)),
        w1a=w1[:F_EMB], w1b=w1[F_EMB:],
        b1=jnp.full((1, 2 * H), 1.0, jnp.float32),
        w2a=w2[:F_EMB], w2b=w2[F_EMB:],
        b2=jnp.zeros((1, H), jnp.float32),
        # nn.Linear(64, 1) default init: U(-1/sqrt(64), 1/sqrt(64))
        wp=jax.random.uniform(ks[4], (1, 64), jnp.float32, -0.125, 0.125),
        bp=jax.random.uniform(ks[5], (1,), jnp.float32, -0.125, 0.125),
    )

    # Multi-hot integer code inputs (the reference calls .long() on them).
    inputs = (jax.random.uniform(ks[6], (B, S, N)) > 0.5).astype(jnp.int32)
    visit_lens = jnp.full((B,), S, jnp.int32)  # unused by forward()

    fwd = jax.jit(functools.partial(tgcn_forward, params, lap))
    out = jax.block_until_ready(fwd(inputs, visit_lens))
    assert out.shape == (B, 1) and out.dtype == jnp.float32

    # Numerical cross-check against the straight-line JAX port of the module.
    ref = jax.block_until_ready(_tgcn_reference(params, lap, inputs))
    np.testing.assert_allclose(np.asarray(out), np.asarray(ref),
                               rtol=2e-2, atol=2e-2)
    print("KERNEL_OK")
</pallas_src>

<mosaic_0001>
module attributes {stable_mosaic.version = 11 : i64} {
  func.func @_tgcn_seq_kernel(%arg0: i32, %arg1: memref<1x32x1xf32, #tpu.memory_space<vmem>>, %arg2: memref<32x32xf32, #tpu.memory_space<vmem>>, %arg3: memref<32x32xf32, #tpu.memory_space<vmem>>, %arg4: memref<32x16xf32, #tpu.memory_space<vmem>>, %arg5: memref<32x16xf32, #tpu.memory_space<vmem>>, %arg6: memref<32x32xf32, #tpu.memory_space<vmem>>, %arg7: memref<32x16xf32, #tpu.memory_space<vmem>>, %arg8: memref<32x16xf32, #tpu.memory_space<vmem>>, %arg9: memref<32x128xf32, #tpu.memory_space<vmem>>, %arg10: memref<64x128xf32, #tpu.memory_space<vmem>>, %arg11: memref<1x128xf32, #tpu.memory_space<vmem>>, %arg12: memref<32x64xf32, #tpu.memory_space<vmem>>, %arg13: memref<64x64xf32, #tpu.memory_space<vmem>>, %arg14: memref<1x64xf32, #tpu.memory_space<vmem>>, %arg15: memref<16x128xf32, #tpu.memory_space<vmem>>, %arg16: memref<16x128xf32, #tpu.memory_space<vmem>>) attributes {dimension_semantics = [#tpu.dimension_semantics<arbitrary>], iteration_bounds = array<i64: 4>, scalar_prefetch = 0 : i64, scratch_operands = 1 : i64, tpu.core_type = #tpu.core_type<tc>, window_params = [{transform_indices = @transform_0, window_bounds = array<i64: 1, 32, 1>}, {pipeline_mode = #tpu.pipeline_mode<synchronous>, transform_indices = @transform_1, window_bounds = array<i64: 32, 32>}, {pipeline_mode = #tpu.pipeline_mode<synchronous>, transform_indices = @transform_2, window_bounds = array<i64: 32, 32>}, {pipeline_mode = #tpu.pipeline_mode<synchronous>, transform_indices = @transform_3, window_bounds = array<i64: 32, 16>}, {pipeline_mode = #tpu.pipeline_mode<synchronous>, transform_indices = @transform_4, window_bounds = array<i64: 32, 16>}, {pipeline_mode = #tpu.pipeline_mode<synchronous>, transform_indices = @transform_5, window_bounds = array<i64: 32, 32>}, {pipeline_mode = #tpu.pipeline_mode<synchronous>, transform_indices = @transform_6, window_bounds = array<i64: 32, 16>}, {pipeline_mode = #tpu.pipeline_mode<synchronous>, transform_indices = @transform_7, window_bounds = array<i64: 32, 16>}, {pipeline_mode = #tpu.pipeline_mode<synchronous>, transform_indices = @transform_8, window_bounds = array<i64: 32, 128>}, {pipeline_mode = #tpu.pipeline_mode<synchronous>, transform_indices = @transform_9, window_bounds = array<i64: 64, 128>}, {pipeline_mode = #tpu.pipeline_mode<synchronous>, transform_indices = @transform_10, window_bounds = array<i64: 1, 128>}, {pipeline_mode = #tpu.pipeline_mode<synchronous>, transform_indices = @transform_11, window_bounds = array<i64: 32, 64>}, {pipeline_mode = #tpu.pipeline_mode<synchronous>, transform_indices = @transform_12, window_bounds = array<i64: 64, 64>}, {pipeline_mode = #tpu.pipeline_mode<synchronous>, transform_indices = @transform_13, window_bounds = array<i64: 1, 64>}, {pipeline_mode = #tpu.pipeline_mode<synchronous>, transform_indices = @transform_14, window_bounds = array<i64: 16, 128>}]} {
    %c0_i32 = arith.constant 0 : i32
    %0 = arith.cmpi eq, %arg0, %c0_i32 : i32
    %1 = arith.extui %0 : i1 to i32
    %c0_i32_0 = arith.constant 0 : i32
    %2 = arith.cmpi ne, %1, %c0_i32_0 : i32
    scf.if %2 {
      %cst_56 = arith.constant 0.000000e+00 : f32
      %76 = vector.broadcast %cst_56 : f32 to vector<16x128xf32>
      %c0_57 = arith.constant 0 : index
      %c0_58 = arith.constant 0 : index
      %77 = vector.load %arg16[%c0_57, %c0_58] : memref<16x128xf32, #tpu.memory_space<vmem>>, vector<16x128xf32>
      tpu.vector_store %arg16[%c0_57, %c0_58], %76 {strides = array<i32>} : memref<16x128xf32, #tpu.memory_space<vmem>>, vector<16x128xf32>,
      %cst_59 = arith.constant 0.000000e+00 : f32
      %78 = vector.broadcast %cst_59 : f32 to vector<16x128xf32>
      %c0_60 = arith.constant 0 : index
      %c0_61 = arith.constant 0 : index
      %79 = vector.load %arg15[%c0_60, %c0_61] : memref<16x128xf32, #tpu.memory_space<vmem>>, vector<16x128xf32>
      tpu.vector_store %arg15[%c0_60, %c0_61], %78 {strides = array<i32>} : memref<16x128xf32, #tpu.memory_space<vmem>>, vector<16x128xf32>,
    } else {
    }
    %c0 = arith.constant 0 : index
    %c0_1 = arith.constant 0 : index
    %c0_2 = arith.constant 0 : index
    %3 = vector.load %arg1[%c0, %c0_1, %c0_2] : memref<1x32x1xf32, #tpu.memory_space<vmem>>, vector<1x32x1xf32>
    %4 = vector.shape_cast %3 : vector<1x32x1xf32> to vector<32x1xf32>
    %c0_3 = arith.constant 0 : index
    %c0_4 = arith.constant 0 : index
    %5 = vector.load %arg2[%c0_3, %c0_4] : memref<32x32xf32, #tpu.memory_space<vmem>>, vector<32x32xf32>
    %6 = vector.broadcast %4 : vector<32x1xf32> to vector<32x32xf32>
    %7 = arith.mulf %6, %5 : vector<32x32xf32>
    %c0_5 = arith.constant 0 : index
    %c0_6 = arith.constant 0 : index
    %8 = vector.load %arg16[%c0_5, %c0_6] : memref<16x128xf32, #tpu.memory_space<vmem>>, vector<16x64xf32>
    %c0_7 = arith.constant 0 : index
    %c64 = arith.constant 64 : index
    %9 = vector.load %arg16[%c0_7, %c64] : memref<16x128xf32, #tpu.memory_space<vmem>>, vector<16x64xf32>
    %c0_8 = arith.constant 0 : index
    %c0_9 = arith.constant 0 : index
    %10 = vector.load %arg4[%c0_8, %c0_9] : memref<32x16xf32, #tpu.memory_space<vmem>>, vector<32x16xf32>
    %cst = arith.constant dense<0.000000e+00> : vector<32x64xf32>
    %11 = tpu.matmul %10, %8, %cst {dimension_numbers = #tpu.dot_dimension_numbers<[1], [0], [0], [1], [0, 0, 1, 1], [], []>} : vector<32x16xf32>, vector<16x64xf32>, vector<32x64xf32> -> vector<32x64xf32>
    %c0_10 = arith.constant 0 : index
    %c0_11 = arith.constant 0 : index
    %12 = vector.load %arg5[%c0_10, %c0_11] : memref<32x16xf32, #tpu.memory_space<vmem>>, vector<32x16xf32>
    %cst_12 = arith.constant dense<0.000000e+00> : vector<32x64xf32>
    %13 = tpu.matmul %12, %9, %cst_12 {dimension_numbers = #tpu.dot_dimension_numbers<[1], [0], [0], [1], [0, 0, 1, 1], [], []>} : vector<32x16xf32>, vector<16x64xf32>, vector<32x64xf32> -> vector<32x64xf32>
    %14 = arith.addf %11, %13 : vector<32x64xf32>
    %c0_13 = arith.constant 0 : index
    %c0_14 = arith.constant 0 : index
    %15 = vector.load %arg3[%c0_13, %c0_14] : memref<32x32xf32, #tpu.memory_space<vmem>>, vector<32x32xf32>
    %cst_15 = arith.constant dense<0.000000e+00> : vector<32x32xf32>
    %16 = tpu.matmul %15, %7, %cst_15 {dimension_numbers = #tpu.dot_dimension_numbers<[1], [0], [0], [1], [0, 0, 1, 1], [], []>} : vector<32x32xf32>, vector<32x32xf32>, vector<32x32xf32> -> vector<32x32xf32>
    %c0_16 = arith.constant 0 : index
    %c0_17 = arith.constant 0 : index
    %17 = vector.load %arg9[%c0_16, %c0_17] : memref<32x128xf32, #tpu.memory_space<vmem>>, vector<32x128xf32>
    %cst_18 = arith.constant dense<0.000000e+00> : vector<32x128xf32>
    %18 = tpu.matmul %16, %17, %cst_18 {dimension_numbers = #tpu.dot_dimension_numbers<[1], [0], [0], [1], [0, 0, 1, 1], [], []>} : vector<32x32xf32>, vector<32x128xf32>, vector<32x128xf32> -> vector<32x128xf32>
    %c0_19 = arith.constant 0 : index
    %c0_20 = arith.constant 0 : index
    %19 = vector.load %arg10[%c0_19, %c0_20] : memref<64x128xf32, #tpu.memory_space<vmem>>, vector<64x128xf32>
    %cst_21 = arith.constant dense<0.000000e+00> : vector<32x128xf32>
    %20 = tpu.matmul %14, %19, %cst_21 {dimension_numbers = #tpu.dot_dimension_numbers<[1], [0], [0], [1], [0, 0, 1, 1], [], []>} : vector<32x64xf32>, vector<64x128xf32>, vector<32x128xf32> -> vector<32x128xf32>
    %21 = arith.addf %18, %20 : vector<32x128xf32>
    %c0_22 = arith.constant 0 : index
    %c0_23 = arith.constant 0 : index
    %22 = vector.load %arg11[%c0_22, %c0_23] : memref<1x128xf32, #tpu.memory_space<vmem>>, vector<1x128xf32>
    %23 = vector.broadcast %22 : vector<1x128xf32> to vector<32x128xf32>
    %24 = arith.addf %21, %23 : vector<32x128xf32>
    %25 = arith.negf %24 : vector<32x128xf32>
    %26 = math.exp %25 : vector<32x128xf32>
    %cst_24 = arith.constant 1.000000e+00 : f32
    %27 = vector.broadcast %cst_24 : f32 to vector<32x128xf32>
    %28 = arith.addf %27, %26 : vector<32x128xf32>
    %29 = arith.divf %27, %28 : vector<32x128xf32>
    %30 = vector.extract_strided_slice %29 {offsets = [0, 0], sizes = [16, 128], strides = [1, 1]} : vector<32x128xf32> to vector<16x128xf32>
    %31 = vector.extract_strided_slice %29 {offsets = [16, 0], sizes = [16, 128], strides = [1, 1]} : vector<32x128xf32> to vector<16x128xf32>
    %32 = vector.extract_strided_slice %30 {offsets = [0, 0], sizes = [16, 64], strides = [1, 1]} : vector<16x128xf32> to vector<16x64xf32>
    %33 = arith.mulf %32, %8 : vector<16x64xf32>
    %34 = vector.extract_strided_slice %30 {offsets = [0, 64], sizes = [16, 64], strides = [1, 1]} : vector<16x128xf32> to vector<16x64xf32>
    %35 = arith.mulf %34, %9 : vector<16x64xf32>
    %c0_25 = arith.constant 0 : index
    %c0_26 = arith.constant 0 : index
    %36 = vector.load %arg7[%c0_25, %c0_26] : memref<32x16xf32, #tpu.memory_space<vmem>>, vector<32x16xf32>
    %cst_27 = arith.constant dense<0.000000e+00> : vector<32x64xf32>
    %37 = tpu.matmul %36, %33, %cst_27 {dimension_numbers = #tpu.dot_dimension_numbers<[1], [0], [0], [1], [0, 0, 1, 1], [], []>} : vector<32x16xf32>, vector<16x64xf32>, vector<32x64xf32> -> vector<32x64xf32>
    %c0_28 = arith.constant 0 : index
    %c0_29 = arith.constant 0 : index
    %38 = vector.load %arg8[%c0_28, %c0_29] : memref<32x16xf32, #tpu.memory_space<vmem>>, vector<32x16xf32>
    %cst_30 = arith.constant dense<0.000000e+00> : vector<32x64xf32>
    %39 = tpu.matmul %38, %35, %cst_30 {dimension_numbers = #tpu.dot_dimension_numbers<[1], [0], [0], [1], [0, 0, 1, 1], [], []>} : vector<32x16xf32>, vector<16x64xf32>, vector<32x64xf32> -> vector<32x64xf32>
    %40 = arith.addf %37, %39 : vector<32x64xf32>
    %c0_31 = arith.constant 0 : index
    %c0_32 = arith.constant 0 : index
    %41 = vector.load %arg6[%c0_31, %c0_32] : memref<32x32xf32, #tpu.memory_space<vmem>>, vector<32x32xf32>
    %cst_33 = arith.constant dense<0.000000e+00> : vector<32x32xf32>
    %42 = tpu.matmul %41, %7, %cst_33 {dimension_numbers = #tpu.dot_dimension_numbers<[1], [0], [0], [1], [0, 0, 1, 1], [], []>} : vector<32x32xf32>, vector<32x32xf32>, vector<32x32xf32> -> vector<32x32xf32>
    %c0_34 = arith.constant 0 : index
    %c0_35 = arith.constant 0 : index
    %43 = vector.load %arg12[%c0_34, %c0_35] : memref<32x64xf32, #tpu.memory_space<vmem>>, vector<32x64xf32>
    %cst_36 = arith.constant dense<0.000000e+00> : vector<32x64xf32>
    %44 = tpu.matmul %42, %43, %cst_36 {dimension_numbers = #tpu.dot_dimension_numbers<[1], [0], [0], [1], [0, 0, 1, 1], [], []>} : vector<32x32xf32>, vector<32x64xf32>, vector<32x64xf32> -> vector<32x64xf32>
    %c0_37 = arith.constant 0 : index
    %c0_38 = arith.constant 0 : index
    %45 = vector.load %arg13[%c0_37, %c0_38] : memref<64x64xf32, #tpu.memory_space<vmem>>, vector<64x64xf32>
    %cst_39 = arith.constant dense<0.000000e+00> : vector<32x64xf32>
    %46 = tpu.matmul %40, %45, %cst_39 {dimension_numbers = #tpu.dot_dimension_numbers<[1], [0], [0], [1], [0, 0, 1, 1], [], []>} : vector<32x64xf32>, vector<64x64xf32>, vector<32x64xf32> -> vector<32x64xf32>
    %47 = arith.addf %44, %46 : vector<32x64xf32>
    %c0_40 = arith.constant 0 : index
    %c0_41 = arith.constant 0 : index
    %48 = vector.load %arg14[%c0_40, %c0_41] : memref<1x64xf32, #tpu.memory_space<vmem>>, vector<1x64xf32>
    %49 = vector.broadcast %48 : vector<1x64xf32> to vector<32x64xf32>
    %50 = arith.addf %47, %49 : vector<32x64xf32>
    %51 = math.tanh %50 : vector<32x64xf32>
    %52 = vector.extract_strided_slice %51 {offsets = [0, 0], sizes = [16, 64], strides = [1, 1]} : vector<32x64xf32> to vector<16x64xf32>
    %53 = vector.extract_strided_slice %51 {offsets = [16, 0], sizes = [16, 64], strides = [1, 1]} : vector<32x64xf32> to vector<16x64xf32>
    %54 = vector.extract_strided_slice %31 {offsets = [0, 0], sizes = [16, 64], strides = [1, 1]} : vector<16x128xf32> to vector<16x64xf32>
    %55 = arith.mulf %54, %8 : vector<16x64xf32>
    %56 = vector.extract_strided_slice %31 {offsets = [0, 0], sizes = [16, 64], strides = [1, 1]} : vector<16x128xf32> to vector<16x64xf32>
    %cst_42 = arith.constant 1.000000e+00 : f32
    %57 = vector.broadcast %cst_42 : f32 to vector<16x64xf32>
    %58 = arith.subf %57, %56 : vector<16x64xf32>
    %59 = arith.mulf %58, %52 : vector<16x64xf32>
    %60 = arith.addf %55, %59 : vector<16x64xf32>
    %61 = vector.extract_strided_slice %31 {offsets = [0, 64], sizes = [16, 64], strides = [1, 1]} : vector<16x128xf32> to vector<16x64xf32>
    %62 = arith.mulf %61, %9 : vector<16x64xf32>
    %63 = vector.extract_strided_slice %31 {offsets = [0, 64], sizes = [16, 64], strides = [1, 1]} : vector<16x128xf32> to vector<16x64xf32>
    %cst_43 = arith.constant 1.000000e+00 : f32
    %64 = vector.broadcast %cst_43 : f32 to vector<16x64xf32>
    %65 = arith.subf %64, %63 : vector<16x64xf32>
    %66 = arith.mulf %65, %53 : vector<16x64xf32>
    %67 = arith.addf %62, %66 : vector<16x64xf32>
    %c0_44 = arith.constant 0 : index
    %c0_45 = arith.constant 0 : index
    %68 = vector.load %arg16[%c0_44, %c0_45] : memref<16x128xf32, #tpu.memory_space<vmem>>, vector<16x64xf32>
    tpu.vector_store %arg16[%c0_44, %c0_45], %60 {strides = array<i32>} : memref<16x128xf32, #tpu.memory_space<vmem>>, vector<16x64xf32>,
    %c0_46 = arith.constant 0 : index
    %c64_47 = arith.constant 64 : index
    %69 = vector.load %arg16[%c0_46, %c64_47] : memref<16x128xf32, #tpu.memory_space<vmem>>, vector<16x64xf32>
    tpu.vector_store %arg16[%c0_46, %c64_47], %67 {strides = array<i32>} : memref<16x128xf32, #tpu.memory_space<vmem>>, vector<16x64xf32>,
    %c0_48 = arith.constant 0 : index
    %c0_49 = arith.constant 0 : index
    %70 = vector.load %arg15[%c0_48, %c0_49] : memref<16x128xf32, #tpu.memory_space<vmem>>, vector<16x64xf32>
    %71 = arith.addf %70, %60 : vector<16x64xf32>
    %c0_50 = arith.constant 0 : index
    %c0_51 = arith.constant 0 : index
    %72 = vector.load %arg15[%c0_50, %c0_51] : memref<16x128xf32, #tpu.memory_space<vmem>>, vector<16x64xf32>
    tpu.vector_store %arg15[%c0_50, %c0_51], %71 {strides = array<i32>} : memref<16x128xf32, #tpu.memory_space<vmem>>, vector<16x64xf32>,
    %c0_52 = arith.constant 0 : index
    %c64_53 = arith.constant 64 : index
    %73 = vector.load %arg15[%c0_52, %c64_53] : memref<16x128xf32, #tpu.memory_space<vmem>>, vector<16x64xf32>
    %74 = arith.addf %73, %67 : vector<16x64xf32>
    %c0_54 = arith.constant 0 : index
    %c64_55 = arith.constant 64 : index
    %75 = vector.load %arg15[%c0_54, %c64_55] : memref<16x128xf32, #tpu.memory_space<vmem>>, vector<16x64xf32>
    tpu.vector_store %arg15[%c0_54, %c64_55], %74 {strides = array<i32>} : memref<16x128xf32, #tpu.memory_space<vmem>>, vector<16x64xf32>,
    return
  }
  func.func @transform_0(%arg0: i32) -> (i32, i32, i32) {
    %c0_i32 = arith.constant 0 : i32
    %c0_i32_0 = arith.constant 0 : i32
    %c0_i32_1 = arith.constant 0 : i32
    return %arg0, %c0_i32, %c0_i32_0 : i32, i32, i32
  }
  func.func @transform_1(%arg0: i32) -> (i32, i32) {
    %c0_i32 = arith.constant 0 : i32
    %c0_i32_0 = arith.constant 0 : i32
    %c0_i32_1 = arith.constant 0 : i32
    return %c0_i32, %c0_i32_0 : i32, i32
  }
  func.func @transform_2(%arg0: i32) -> (i32, i32) {
    %c0_i32 = arith.constant 0 : i32
    %c0_i32_0 = arith.constant 0 : i32
    %c0_i32_1 = arith.constant 0 : i32
    return %c0_i32, %c0_i32_0 : i32, i32
  }
  func.func @transform_3(%arg0: i32) -> (i32, i32) {
    %c0_i32 = arith.constant 0 : i32
    %c0_i32_0 = arith.constant 0 : i32
    %c0_i32_1 = arith.constant 0 : i32
    return %c0_i32, %c0_i32_0 : i32, i32
  }
  func.func @transform_4(%arg0: i32) -> (i32, i32) {
    %c0_i32 = arith.constant 0 : i32
    %c0_i32_0 = arith.constant 0 : i32
    %c0_i32_1 = arith.constant 0 : i32
    return %c0_i32, %c0_i32_0 : i32, i32
  }
  func.func @transform_5(%arg0: i32) -> (i32, i32) {
    %c0_i32 = arith.constant 0 : i32
    %c0_i32_0 = arith.constant 0 : i32
    %c0_i32_1 = arith.constant 0 : i32
    return %c0_i32, %c0_i32_0 : i32, i32
  }
  func.func @transform_6(%arg0: i32) -> (i32, i32) {
    %c0_i32 = arith.constant 0 : i32
    %c0_i32_0 = arith.constant 0 : i32
    %c0_i32_1 = arith.constant 0 : i32
    return %c0_i32, %c0_i32_0 : i32, i32
  }
  func.func @transform_7(%arg0: i32) -> (i32, i32) {
    %c0_i32 = arith.constant 0 : i32
    %c0_i32_0 = arith.constant 0 : i32
    %c0_i32_1 = arith.constant 0 : i32
    return %c0_i32, %c0_i32_0 : i32, i32
  }
  func.func @transform_8(%arg0: i32) -> (i32, i32) {
    %c0_i32 = arith.constant 0 : i32
    %c0_i32_0 = arith.constant 0 : i32
    %c0_i32_1 = arith.constant 0 : i32
    return %c0_i32, %c0_i32_0 : i32, i32
  }
  func.func @transform_9(%arg0: i32) -> (i32, i32) {
    %c0_i32 = arith.constant 0 : i32
    %c0_i32_0 = arith.constant 0 : i32
    %c0_i32_1 = arith.constant 0 : i32
    return %c0_i32, %c0_i32_0 : i32, i32
  }
  func.func @transform_10(%arg0: i32) -> (i32, i32) {
    %c0_i32 = arith.constant 0 : i32
    %c0_i32_0 = arith.constant 0 : i32
    %c0_i32_1 = arith.constant 0 : i32
    return %c0_i32, %c0_i32_0 : i32, i32
  }
  func.func @transform_11(%arg0: i32) -> (i32, i32) {
    %c0_i32 = arith.constant 0 : i32
    %c0_i32_0 = arith.constant 0 : i32
    %c0_i32_1 = arith.constant 0 : i32
    return %c0_i32, %c0_i32_0 : i32, i32
  }
  func.func @transform_12(%arg0: i32) -> (i32, i32) {
    %c0_i32 = arith.constant 0 : i32
    %c0_i32_0 = arith.constant 0 : i32
    %c0_i32_1 = arith.constant 0 : i32
    return %c0_i32, %c0_i32_0 : i32, i32
  }
  func.func @transform_13(%arg0: i32) -> (i32, i32) {
    %c0_i32 = arith.constant 0 : i32
    %c0_i32_0 = arith.constant 0 : i32
    %c0_i32_1 = arith.constant 0 : i32
    return %c0_i32, %c0_i32_0 : i32, i32
  }
  func.func @transform_14(%arg0: i32) -> (i32, i32) {
    %c0_i32 = arith.constant 0 : i32
    %c0_i32_0 = arith.constant 0 : i32
    %c0_i32_1 = arith.constant 0 : i32
    return %c0_i32, %c0_i32_0 : i32, i32
  }
}

</mosaic_0001>

<bundles_post_ra>
// kernel: tgcn_forward.1
= control target key start
LH: loop header
LB: loop body
LE: loop exit
PB: predicated region body
PF: predicated region fallthrough
CT: control target
= control target key end

     0   :  { %s1331_s29 = smov 0   ;;  %s1608_s0 = inlined_call_operand.vmem [shape: f32[4,32,1], index: 0, kind: input, shape index: {}]   ;;  %s1609_s1 = inlined_call_operand.vmem [shape: f32[32,32], index: 1, kind: input, shape index: {}]   ;;  %s1610_s2 = inlined_call_operand.vmem [shape: f32[32,32], index: 2, kind: input, shape index: {}]   ;;  %s1611_s3 = inlined_call_operand.vmem [shape: f32[32,16], index: 3, kind: input, shape index: {}]   ;;  %s1612_s4 = inlined_call_operand.vmem [shape: f32[32,16], index: 4, kind: input, shape index: {}]   ;;  %s1613_s5 = inlined_call_operand.vmem [shape: f32[32,32], index: 5, kind: input, shape index: {}]   ;;  %s1614_s6 = inlined_call_operand.vmem [shape: f32[32,16], index: 6, kind: input, shape index: {}]   ;;  %s1615_s7 = inlined_call_operand.vmem [shape: f32[32,16], index: 7, kind: input, shape index: {}]   ;;  %s1616_s8 = inlined_call_operand.vmem [shape: f32[32,128], index: 8, kind: input, shape index: {}]   ;;  %s1617_s9 = inlined_call_operand.vmem [shape: f32[64,128], index: 9, kind: input, shape index: {}]   ;;  %s1618_s10 = inlined_call_operand.vmem [shape: f32[1,128], index: 10, kind: input, shape index: {}]   ;;  %s1619_s11 = inlined_call_operand.vmem [shape: f32[32,64], index: 11, kind: input, shape index: {}]   ;;  %s1620_s12 = inlined_call_operand.vmem [shape: f32[64,64], index: 12, kind: input, shape index: {}]   ;;  %s1621_s13 = inlined_call_operand.vmem [shape: f32[1,64], index: 13, kind: input, shape index: {}]   ;;  %s1622_s14 = inlined_call_operand.vmem [shape: f32[16,128], index: 14, kind: output, shape index: {}]  }
   0x1 LB: > { %s1135_s30 = sadd.s32 4294967295, %s1251_s29   ;;  %p1138_p0 = scmp.ge.s32.totalorder %s1251_s29, 1  ;;  %s1251_s29 = sphi %s1331_s29, %s24_s29  }
   0x2   : > { %p407_p1 = scmp.lt.s32.totalorder %s1251_s29, 5 }
   0x4   : > { %p408_p2 = pnand %p1138_p0, %p407_p1 }
   0x5   : > { %p448_p3 = scmp.lt.s32.totalorder (!%p408_p2), %s1135_s30, 3  ;;  %p1141_p4 = scmp.ne.s32.totalorder (!%p408_p2), %s1135_s30, 0 }
   0x6   : > { %411 = sbr.rel (%p408_p2) target bundleno = 963 (0x3c3), region = 76 }
   0xb   : > { %s449_s15 = scalar_select %p448_p3, %s1135_s30, 3 }
   0xc   : > { %456 = sbr.rel (%p1141_p4) target bundleno = 22 (0x16), region = 80 }
   0xd   : > { %s1188_s16 = sshll.u32 %s449_s15, 5 }
   0xe   : > { %s452_s19 = scalar_lea.vmem %s1608_s0, %s1188_s16 }
  0x11   : > { %v1253_v0 = vmov 0.0  }
  0x12   : > { %457 = vst [vmem:[#allocation2] sm:$0xff] %v1253_v0 }
  0x13   : > { %458 = vst [vmem:[#allocation2 + $0x8] sm:$0xff] %v1253_v0 }
  0x14   : > { %459 = vst [vmem:[%s1622_s14] sm:$0xff] %v1253_v0 }
  0x15   : > { %460 = vst [vmem:[%s1622_s14 + $0x8] sm:$0xff] %v1253_v0 }
  0x16 PF: > { %v464_v1 = vld [vmem:[%s452_s19 + $0x18] sm:$0xff]  ;;  %v462_v2 = vld [vmem:[%s452_s19 + $0x8] sm:$0xff]  ;;  %v1254_v3 = vmov 0   ;;  %v461_v4 = vld [vmem:[%s452_s19] sm:$0xff]  ;;  %s1255_s15 = smov 64   ;;  %vm511_vm0 = vcmask 130048  }
  0x17   : > { %1207 = vset.pattern.permute.xlu1 %v1254_v3  ;;  %1206 = vset.pattern.permute.xlu0 %v1254_v3  ;;  %v651_v7 = vld [vmem:[%s1617_s9 + $0x38] sm:$0xff]  ;;  %v650_v8 = vld [vmem:[%s1617_s9 + $0x30] sm:$0xff]  ;;  %v649_v11 = vld [vmem:[%s1617_s9 + $0x28] sm:$0xff]  ;;  %vm598_vm1 = vcmask 261120   ;;  %vm652_vm2 = vcmask 523264  }
  0x18   : > { %486 = vperm.xlu0 %1206, %v464_v1   ;;  %476 = vperm.xlu1 %1207, %v462_v2   ;;  %v463_v10 = vld [vmem:[%s452_s19 + $0x10] sm:$0xff]  ;;  %v648_v12 = vld [vmem:[%s1617_s9 + $0x20] sm:$0xff]  ;;  %v647_v13 = vld [vmem:[%s1617_s9 + $0x18] sm:$0xff] }
  0x19   : > { %v1350_v6 = vld [vmem:[#allocation2] sm:$0xff]  ;;  %1213 = vset.pattern.permute.xlu2 %v1254_v3  ;;  %v646_v14 = vld [vmem:[%s1617_s9 + $0x10] sm:$0xff]  ;;  %v645_v15 = vld [vmem:[%s1617_s9 + $0x8] sm:$0xff] }
  0x1a   : > { %v1348_v5 = vld [vmem:[#allocation2 + $0x8] sm:$0xff]  ;;  %471 = vperm.xlu2 %1213, %v461_v4   ;;  %v644_v16 = vld [vmem:[%s1617_s9] sm:$0xff]  ;;  %v497_v17 = vld [vmem:[%s1611_s3 + $0x10] sm:$0xff] }
  0x1b   : > { %1189 = vmatpush.msra.mxu3 %v1348_v5  ;;  %579 = vmatpush.msra.mxu1 %v1348_v5  ;;  %v1208_v9 = vpack.i.bf16 %v1350_v6, %v1348_v5  ;;  %v495_v18 = vld [vmem:[%s1611_s3] sm:$0xff]  ;;  %v496_v19 = vld [vmem:[%s1611_s3 + $0x8] sm:$0xff]  ;;  %v468_v20 = vld [vmem:[%s1609_s1 + $0x18] sm:$0xff] }
  0x1c   : > { %v498_v23 = vld [vmem:[%s1611_s3 + $0x18] sm:$0xff]  ;;  %v467_v25 = vld [vmem:[%s1609_s1 + $0x10] sm:$0xff]  ;;  %v466_v27 = vld [vmem:[%s1609_s1 + $0x8] sm:$0xff] }
  0x1d   : > { %1190 = vmatpush.msra.mxu3 %v1350_v6  ;;  %580 = vmatpush.msra.mxu1 %v1350_v6  ;;  %v465_v30 = vld [vmem:[%s1609_s1] sm:$0xff]  ;;  %v643_v37 = vld [vmem:[%s1616_s8 + $0x18] sm:$0xff]  ;;  %v642_v39 = vld [vmem:[%s1616_s8 + $0x10] sm:$0xff] }
  0x1e   : > { %1148 = vmatmul.msk.f32.vlgmr.msra.gmra.mxu3 %vm511_vm0, %v497_v17  ;;  %1146 = vmatmul.msk.f32.vlgmr.msra.gmra.mxu1 %vm511_vm0, %v495_v18  ;;  %v499_v36 = vld [vmem:[%s1612_s4] sm:$0xff]  ;;  %v500_v40 = vld [vmem:[%s1612_s4 + $0x8] sm:$0xff]  ;;  %v501_v42 = vld [vmem:[%s1612_s4 + $0x10] sm:$0xff] }
  0x1f   : > { %673 = vmatpush.msrb.mxu3 %v651_v7  ;;  %v594_v38 = vld [vmem:[%s1610_s2] sm:$0xff]  ;;  %v595_v41 = vld [vmem:[%s1610_s2 + $0x8] sm:$0xff]  ;;  %v596_v43 = vld [vmem:[%s1610_s2 + $0x10] sm:$0xff] }
  0x20   : > { %481 = vperm.xlu0 %1206, %v463_v10   ;;  %1209 = vrot.lane.b32.xlu1 %v1208_v9, %s1255_s15  ;;  %v502_v44 = vld [vmem:[%s1612_s4 + $0x18] sm:$0xff]  ;;  %v641_v46 = vld [vmem:[%s1616_s8 + $0x8] sm:$0xff]  ;;  %v640_v47 = vld [vmem:[%s1616_s8] sm:$0xff] }
  0x21   : > { %674 = vmatpush.msrb.mxu3 %v650_v8  ;;  %v597_v45 = vld [vmem:[%s1610_s2 + $0x18] sm:$0xff]  ;;  %v1466_v0 = vld [vmem:[%s1618_s10] ss:$0 sm:$0xff] }
  0x23   : > { %675 = vmatpush.msrb.mxu3 %v649_v11 }
  0x25   : > { %676 = vmatpush.msrb.mxu3 %v648_v12 }
  0x26   : > { %1147 = vmatmul.msk.f32.gmra.mxu1 %vm511_vm0, %v496_v19  ;;  %1149 = vmatmul.msk.f32.gmra.mxu3 %vm511_vm0, %v498_v23 }
  0x27   : > { %677 = vmatpush.msrb.mxu3 %v647_v13 }
  0x29   : > { %678 = vmatpush.msrb.mxu3 %v646_v14 }
  0x2b   : > { %679 = vmatpush.msrb.mxu3 %v645_v15 }
  0x2d   : > { %680 = vmatpush.msrb.mxu3 %v644_v16 }
  0x74   : > { %v472_v26 = vpop.permute.xlu2 %471 }
  0x75   : > { %v489_v34 = vmul.f32 %v472_v26, %v465_v30 }
  0x8a   : > { %v487_v21 = vpop.permute.xlu0 %486  ;;  %v477_v22 = vpop.permute.xlu1 %476 }
  0x8b   : > { %v492_v24 = vmul.f32 %v487_v21, %v468_v20  ;;  %v490_v33 = vmul.f32 %v477_v22, %v466_v27 }
  0x8d   : > { %623 = vmatpush.msra.mxu2 %v492_v24  ;;  %947 = vmatpush.msra.mxu3 %v492_v24 }
  0x92   : > { %v482_v28 = vpop.permute.xlu0 %481  ;;  %v1210_v29 = vpop.permute.xlu1 %1209 }
  0x93   : > { %v491_v31 = vmul.f32 %v482_v28, %v467_v25  ;;  %v1211_v32 = vunpack.i.l.bf16 %v1210_v29  ;;  %v1212_v35 = vunpack.i.h.bf16 %v1210_v29 }
  0x95   : > { %538 = vmatpush.msra.mxu0 %v1211_v32  ;;  %624 = vmatpush.msra.mxu2 %v491_v31 }
  0x96   : > { %948 = vmatpush.msra.mxu3 %v491_v31 }
  0x97   : > { %539 = vmatpush.msra.mxu0 %v1212_v35  ;;  %625 = vmatpush.msra.mxu2 %v490_v33 }
  0x98   : > { %949 = vmatpush.msra.mxu3 %v490_v33  ;;  %1142 = vmatmul.msk.f32.vlgmr.msra.gmra.mxu0 %vm511_vm0, %v499_v36 }
  0x99   : > { %626 = vmatpush.msra.mxu2 %v489_v34  ;;  %718 = vmatpush.msrb.mxu0 %v643_v37 }
  0x9a   : > { %950 = vmatpush.msra.mxu3 %v489_v34  ;;  %1150 = vmatmul.msk.f32.vlgmr.msra.gmra.mxu2 %vm598_vm1, %v594_v38 }
  0x9b   : > { %719 = vmatpush.msrb.mxu0 %v642_v39  ;;  %1191 = vmatpush.msrb.mxu2 %v643_v37  ;;  %v582_v48 = vpop.f32.mrf.mxu1 }
  0x9d   : > { %1192 = vmatpush.msrb.mxu2 %v642_v39  ;;  %720 = vmatpush.msrb.mxu0 %v641_v46 }
  0x9f   : > { %1193 = vmatpush.msrb.mxu2 %v641_v46  ;;  %721 = vmatpush.msrb.mxu0 %v640_v47  ;;  %v822_v46 = vld [vmem:[%s1614_s6 + $0x8] sm:$0xff] }
  0xa0   : > { %1143 = vmatmul.msk.f32.gmra.mxu0 %vm511_vm0, %v500_v40 }
  0xa1   : > { %1194 = vmatpush.msrb.mxu2 %v640_v47  ;;  %v588_v55 = vpop.f32.mrf.mxu3  ;;  %v920_v47 = vld [vmem:[%s1613_s5 + $0x8] sm:$0xff] }
  0xa2   : > { %1151 = vmatmul.msk.f32.gmra.mxu2 %vm598_vm1, %v595_v41 }
  0xa3   : > { %v585_v51 = vpop.f32.mrf.mxu1 }
  0xa8   : > { %1144 = vmatmul.msk.f32.gmra.mxu0 %vm511_vm0, %v501_v42 }
  0xa9   : > { %v591_v59 = vpop.f32.mrf.mxu3 }
  0xaa   : > { %1152 = vmatmul.msk.f32.gmra.mxu2 %vm598_vm1, %v596_v43 }
  0xb0   : > { %1145 = vmatmul.msk.f32.gmra.mxu0 %vm511_vm0, %v502_v44  ;;  %v821_v44 = vld [vmem:[%s1614_s6] sm:$0xff] }
  0xb2   : > { %1153 = vmatmul.msk.f32.gmra.mxu2 %vm598_vm1, %v597_v45  ;;  %v919_v45 = vld [vmem:[%s1613_s5] sm:$0xff] }
 0x115   : > { %v541_v49 = vpop.f32.mrf.mxu0 }
 0x116   : > { %v583_v50 = vadd.f32 %v582_v48, %v541_v49  ;;  %v823_v48 = vld [vmem:[%s1614_s6 + $0x10] sm:$0xff] }
 0x117   : > { %v921_v49 = vld [vmem:[%s1613_s5 + $0x10] sm:$0xff] }
 0x118   : > { %1154 = vmatmul.msk.f32.vlgmr.msrb.gmra.mxu3 %vm652_vm2, %v583_v50  ;;  %v824_v50 = vld [vmem:[%s1614_s6 + $0x18] sm:$0xff] }
 0x11d   : > { %v544_v52 = vpop.f32.mrf.mxu0  ;;  %v628_v53 = vpop.f32.mrf.mxu2 }
 0x11e   : > { %v586_v54 = vadd.f32 %v585_v51, %v544_v52  ;;  %1158 = vmatmul.msk.f32.vlgmr.msrb.gmra.mxu0 %vm598_vm1, %v628_v53  ;;  %v922_v51 = vld [vmem:[%s1613_s5 + $0x18] sm:$0xff]  ;;  %v974_v53 = vld [vmem:[%s1620_s12 + $0x30] sm:$0xff] }
 0x11f   : > { %v975_v52 = vld [vmem:[%s1620_s12 + $0x38] sm:$0xff] }
 0x120   : > { %1155 = vmatmul.msk.f32.gmra.mxu3 %vm652_vm2, %v586_v54  ;;  %996 = vmatpush.msra.mxu0 %v975_v52 }
 0x122   : > { %997 = vmatpush.msra.mxu0 %v974_v53 }
 0x125   : > { %v631_v56 = vpop.f32.mrf.mxu2  ;;  %v547_v57 = vpop.f32.mrf.mxu0 }
 0x126   : > { %1159 = vmatmul.msk.f32.gmra.mxu0 %vm598_vm1, %v631_v56  ;;  %v589_v58 = vadd.f32 %v588_v55, %v547_v57  ;;  %v973_v55 = vld [vmem:[%s1620_s12 + $0x28] sm:$0xff]  ;;  %v972_v57 = vld [vmem:[%s1620_s12 + $0x20] sm:$0xff] }
 0x127   : > { %998 = vmatpush.msra.mxu0 %v973_v55 }
 0x128   : > { %1156 = vmatmul.msk.f32.gmra.mxu3 %vm652_vm2, %v589_v58 }
 0x129   : > { %999 = vmatpush.msra.mxu0 %v972_v57 }
 0x12d   : > { %v634_v60 = vpop.f32.mrf.mxu2  ;;  %v550_v61 = vpop.f32.mrf.mxu0 }
 0x12e   : > { %1160 = vmatmul.msk.f32.vlgmr.msrb.gmra.mxu2 %vm598_vm1, %v634_v60  ;;  %v592_v62 = vadd.f32 %v591_v59, %v550_v61  ;;  %v825_v59 = vld [vmem:[%s1615_s7] sm:$0xff]  ;;  %v967_v60 = vld [vmem:[%s1619_s11 + $0x18] sm:$0xff] }
 0x12f   : > { %v971_v61 = vld [vmem:[%s1620_s12 + $0x18] sm:$0xff] }
 0x130   : > { %1157 = vmatmul.msk.f32.gmra.mxu3 %vm652_vm2, %v592_v62  ;;  %v966_v62 = vld [vmem:[%s1619_s11 + $0x10] sm:$0xff]  ;;  %1000 = vmatpush.msra.mxu0 %v971_v61 }
 0x135   : > { %v637_v63 = vpop.f32.mrf.mxu2 }
 0x136   : > { %1161 = vmatmul.msk.f32.gmra.mxu2 %vm598_vm1, %v637_v63  ;;  %v970_v63 = vld [vmem:[%s1620_s12 + $0x10] sm:$0xff] }
 0x137   : > { %1001 = vmatpush.msra.mxu0 %v970_v63 }
 0x138   : > { %1174 = vmatmul.msk.f32.vlgmr.msra.gmra.mxu3 %vm598_vm1, %v919_v45 }
 0x140   : > { %1175 = vmatmul.msk.f32.gmra.mxu3 %vm598_vm1, %v920_v47 }
 0x148   : > { %1176 = vmatmul.msk.f32.gmra.mxu3 %vm598_vm1, %v921_v49 }
 0x150   : > { %1177 = vmatmul.msk.f32.gmra.mxu3 %vm598_vm1, %v922_v51 }
 0x19b   : > { %v682_v1 = vpop.f32.mrf.mxu3  ;;  %v723_v2 = vpop.f32.mrf.mxu0 }
 0x19c   : > { %v724_v3 = vadd.f32 %v723_v2, %v682_v1  ;;  %v826_v1 = vld [vmem:[%s1615_s7 + $0x8] sm:$0xff]  ;;  %v827_v2 = vld [vmem:[%s1615_s7 + $0x10] sm:$0xff] }
 0x19e   : > { %v739_v4 = vadd.f32 %v1466_v0, %v724_v3  ;;  %v828_v3 = vld [vmem:[%s1615_s7 + $0x18] sm:$0xff] }
 0x1a0   : > { %v1162_v7 = vmul.f32 -1.442695, %v739_v4 }
 0x1a2   : > { %1221 = vpow2.f32 %v1162_v7  ;;  %v969_v7 = vld [vmem:[%s1620_s12 + $0x8] sm:$0xff] }
 0x1a3   : > { %v685_v8 = vpop.f32.mrf.mxu3  ;;  %v726_v9 = vpop.f32.mrf.mxu0  ;;  %1002 = vmatpush.msra.mxu0 %v969_v7  ;;  %v1095_v7 = vld [vmem:[%s1622_s14] sm:$0xff] }
 0x1a4   : > { %v727_v10 = vadd.f32 %v726_v9, %v685_v8  ;;  %v965_v8 = vld [vmem:[%s1619_s11 + $0x8] sm:$0xff]  ;;  %v968_v9 = vld [vmem:[%s1620_s12] sm:$0xff] }
 0x1a5   : > { %1003 = vmatpush.msra.mxu0 %v968_v9 }
 0x1a6   : > { %v740_v11 = vadd.f32 %v1466_v0, %v727_v10  ;;  %v964_v10 = vld [vmem:[%s1619_s11] sm:$0xff] }
 0x1a8   : > { %v1222_v12 = vpop.eup %1221  ;;  %v1163_v13 = vmul.f32 -1.442695, %v740_v11 }
 0x1a9   : > { %v755_v14 = vadd.f32 1.0, %v1222_v12 }
 0x1aa   : > { %1223 = vpow2.f32 %v1163_v13 }
 0x1ab   : > { %1225 = vrcp.f32 %v755_v14  ;;  %v688_v15 = vpop.f32.mrf.mxu3  ;;  %v770_v28 = vand.u32 2147483648, %v755_v14  ;;  %vm764_vm4 = vweird.f32 %v755_v14  ;;  %v768_v30 = vand.u32 2147483647, %v755_v14 }
 0x1ad   : > { %v771_v35 = vor.u32 1.1754944e-38, %v770_v28  ;;  %vm769_vm8 = vcmp.eq.f32.partialorder %v768_v30, 8.507059e+37 }
 0x1b0   : > { %v1224_v16 = vpop.eup %1223 }
 0x1b1   : > { %v1226_v17 = vpop.eup %1225  ;;  %v756_v18 = vadd.f32 1.0, %v1224_v16  ;;  %v729_v19 = vpop.f32.mrf.mxu2 }
 0x1b2   : > { %v760_v20 = vmul.f32 %v1226_v17, %v755_v14  ;;  %v730_v21 = vadd.f32 %v729_v19, %v688_v15  ;;  %vm765_vm3 = vweird.f32 %v1226_v17 }
 0x1b3   : > { %1227 = vrcp.f32 %v756_v18  ;;  %v785_v31 = vand.u32 2147483648, %v756_v18  ;;  %vm766_vm5 = vmor %vm764_vm4, %vm765_vm3  ;;  %v783_v33 = vand.u32 2147483647, %v756_v18  ;;  %vm779_vm7 = vweird.f32 %v756_v18  ;;  %v691_v4 = vpop.f32.mrf.mxu3 }
 0x1b4   : > { %v761_v22 = vsub.f32 1.0, %v760_v20  ;;  %v1471_v23 = vadd.f32 %v1466_v0, %v730_v21  ;;  %vm1092_vm4 = vcmask 1048064  }
 0x1b5   : > { %v786_v37 = vor.u32 1.1754944e-38, %v785_v31  ;;  %vm784_vm10 = vcmp.eq.f32.partialorder %v783_v33, 8.507059e+37 }
 0x1b6   : > { %v762_v24 = vmul.f32 %v1226_v17, %v761_v22 }
 0x1b8   : > { %v763_v27 = vadd.f32 %v1226_v17, %v762_v24 }
 0x1b9   : > { %v1228_v25 = vpop.eup %1227  ;;  %v732_v13 = vpop.f32.mrf.mxu2 }
 0x1ba   : > { %v775_v26 = vmul.f32 %v1228_v25, %v756_v18  ;;  %vm780_vm6 = vweird.f32 %v1228_v25  ;;  %v767_v34 = vsel %vm766_vm5, %v1226_v17, %v763_v27  ;;  %v733_v30 = vadd.f32 %v732_v13, %v691_v4 }
 0x1bb   : > { %vm781_vm9 = vmor %vm779_vm7, %vm780_vm6  ;;  %v772_v38 = vsel %vm769_vm8, %v771_v35, %v767_v34  ;;  %v952_v11 = vpop.f32.mrf.mxu3 }
 0x1bc   : > { %v776_v29 = vsub.f32 1.0, %v775_v26  ;;  %v819_v42 = vmul.f32 %v772_v38, %v1350_v6  ;;  %v742_v31 = vadd.f32 %v1466_v0, %v733_v30  ;;  %v1220_v0 = vld [vmem:[%s1621_s13] ss:$0 sm:$0xff] }
 0x1be   : > { %v777_v32 = vmul.f32 %v1228_v25, %v776_v29  ;;  %v1164_v29 = vmul.f32 -1.442695, %v1471_v23 }
 0x1c0   : > { %v778_v36 = vadd.f32 %v1228_v25, %v777_v32  ;;  %1229 = vpow2.f32 %v1164_v29  ;;  %v1165_v32 = vmul.f32 -1.442695, %v742_v31 }
 0x1c2   : > { %v782_v39 = vsel %vm781_vm9, %v1228_v25, %v778_v36  ;;  %1231 = vpow2.f32 %v1165_v32 }
 0x1c3   : > { %v787_v40 = vsel %vm784_vm10, %v786_v37, %v782_v39  ;;  %v955_v12 = vpop.f32.mrf.mxu3 }
 0x1c4   : > { %v820_v41 = vmul.f32 %v787_v40, %v1348_v5 }
 0x1c6   : > { %904 = vmatpush.msra.mxu2 %v820_v41  ;;  %v1214_v43 = vpack.i.bf16 %v819_v42, %v820_v41  ;;  %v1230_v33 = vpop.eup %1229 }
 0x1c7   : > { %v757_v34 = vadd.f32 1.0, %v1230_v33 }
 0x1c8   : > { %1215 = vrot.lane.b32.xlu2 %v1214_v43, %s1255_s15  ;;  %905 = vmatpush.msra.mxu2 %v819_v42  ;;  %v1232_v35 = vpop.eup %1231 }
 0x1c9   : > { %1170 = vmatmul.msk.f32.vlgmr.msra.gmra.mxu2 %vm511_vm0, %v821_v44  ;;  %1233 = vrcp.f32 %v757_v34  ;;  %v758_v36 = vadd.f32 1.0, %v1232_v35  ;;  %vm794_vm11 = vweird.f32 %v757_v34  ;;  %v800_v23 = vand.u32 2147483648, %v757_v34 }
 0x1cb   : > { %v958_v14 = vpop.f32.mrf.mxu3  ;;  %1235 = vrcp.f32 %v758_v36  ;;  %v801_v51 = vor.u32 1.1754944e-38, %v800_v23  ;;  %vm809_vm15 = vweird.f32 %v758_v36  ;;  %v815_v55 = vand.u32 2147483648, %v758_v36 }
 0x1cd   : > { %v816_v63 = vor.u32 1.1754944e-38, %v815_v55 }
 0x1cf   : > { %v1234_v37 = vpop.eup %1233 }
 0x1d0   : > { %v790_v38 = vmul.f32 %v1234_v37, %v757_v34  ;;  %vm795_vm12 = vweird.f32 %v1234_v37 }
 0x1d1   : > { %1171 = vmatmul.msk.f32.gmra.mxu2 %vm511_vm0, %v822_v46  ;;  %v1236_v41 = vpop.eup %1235  ;;  %v798_v46 = vand.u32 2147483647, %v757_v34  ;;  %vm796_vm13 = vmor %vm794_vm11, %vm795_vm12 }
 0x1d2   : > { %v791_v40 = vsub.f32 1.0, %v790_v38  ;;  %v805_v43 = vmul.f32 %v1236_v41, %v758_v36 }
 0x1d3   : > { %v961_v16 = vpop.f32.mrf.mxu3  ;;  %vm799_vm14 = vcmp.eq.f32.partialorder %v798_v46, 8.507059e+37 }
 0x1d4   : > { %v792_v42 = vmul.f32 %v1234_v37, %v791_v40  ;;  %v806_v47 = vsub.f32 1.0, %v805_v43 }
 0x1d6   : > { %v793_v45 = vadd.f32 %v1234_v37, %v792_v42  ;;  %v807_v53 = vmul.f32 %v1236_v41, %v806_v47 }
 0x1d8   : > { %v797_v52 = vsel %vm796_vm13, %v1234_v37, %v793_v45  ;;  %v808_v57 = vadd.f32 %v1236_v41, %v807_v53 }
 0x1d9   : > { %1172 = vmatmul.msk.f32.gmra.mxu2 %vm511_vm0, %v823_v48 }
 0x1e1   : > { %1173 = vmatmul.msk.f32.gmra.mxu2 %vm511_vm0, %v824_v50 }
 0x222   : > { %v1216_v54 = vpop.permute.xlu2 %1215 }
 0x223   : > { %v1217_v56 = vunpack.i.l.bf16 %v1216_v54  ;;  %v1218_v58 = vunpack.i.h.bf16 %v1216_v54  ;;  %v802_v54 = vsel %vm799_vm14, %v801_v51, %v797_v52 }
 0x225   : > { %863 = vmatpush.msrb.mxu1 %v1217_v56 }
 0x227   : > { %864 = vmatpush.msrb.mxu1 %v1218_v58  ;;  %v813_v58 = vand.u32 2147483647, %v758_v36 }
 0x228   : > { %1166 = vmatmul.msk.f32.vlgmr.msrb.gmra.mxu1 %vm511_vm0, %v825_v59 }
 0x229   : > { %1041 = vmatpush.msra.mxu1 %v967_v60  ;;  %v1072_v60 = vsub.f32 1.0, %v802_v54  ;;  %vm814_vm3 = vcmp.eq.f32.partialorder %v813_v58, 8.507059e+37 }
 0x22b   : > { %1042 = vmatpush.msra.mxu1 %v966_v62 }
 0x22d   : > { %1043 = vmatpush.msra.mxu1 %v965_v8 }
 0x22f   : > { %1044 = vmatpush.msra.mxu1 %v964_v10 }
 0x230   : > { %1167 = vmatmul.msk.f32.gmra.mxu1 %vm511_vm0, %v826_v1 }
 0x238   : > { %1168 = vmatmul.msk.f32.gmra.mxu1 %vm511_vm0, %v827_v2  ;;  %v1070_v2 = vmul.f32 %v802_v54, %v1350_v6 }
 0x240   : > { %1169 = vmatmul.msk.f32.gmra.mxu1 %vm511_vm0, %v828_v3  ;;  %vm810_vm0 = vweird.f32 %v1236_v41 }
 0x248   : > { %1182 = vmatmul.msk.f32.vlgmr.msra.gmra.mxu1 %vm598_vm1, %v952_v11 }
 0x24c   : > { %v907_v15 = vpop.f32.mrf.mxu2 }
 0x250   : > { %1183 = vmatmul.msk.f32.gmra.mxu1 %vm598_vm1, %v955_v12 }
 0x254   : > { %v910_v19 = vpop.f32.mrf.mxu2 }
 0x258   : > { %1184 = vmatmul.msk.f32.gmra.mxu1 %vm598_vm1, %v958_v14 }
 0x25c   : > { %v913_v22 = vpop.f32.mrf.mxu2 }
 0x260   : > { %1185 = vmatmul.msk.f32.gmra.mxu1 %vm598_vm1, %v961_v16  ;;  %vm811_vm1 = vmor %vm809_vm15, %vm810_vm0 }
 0x261   : > { %v812_v4 = vsel %vm811_vm1, %v1236_v41, %v808_v57 }
 0x262   : > { %v817_v9 = vsel %vm814_vm3, %v816_v63, %v812_v4 }
 0x263   : > { %v1073_v6 = vsub.f32 1.0, %v817_v9 }
 0x264   : > { %v916_v26 = vpop.f32.mrf.mxu2 }
 0x2a5   : > { %v866_v17 = vpop.f32.mrf.mxu1 }
 0x2a6   : > { %v908_v18 = vadd.f32 %v907_v15, %v866_v17  ;;  %v1071_v15 = vmul.f32 %v817_v9, %v1348_v5  ;;  %v1096_v17 = vld [vmem:[%s1622_s14 + $0x8] sm:$0xff] }
 0x2a8   : > { %1178 = vmatmul.msk.f32.vlgmr.msra.gmra.mxu0 %vm652_vm2, %v908_v18 }
 0x2ad   : > { %v869_v20 = vpop.f32.mrf.mxu1 }
 0x2ae   : > { %v911_v21 = vadd.f32 %v910_v19, %v869_v20 }
 0x2b0   : > { %1179 = vmatmul.msk.f32.gmra.mxu0 %vm652_vm2, %v911_v21 }
 0x2b5   : > { %v872_v24 = vpop.f32.mrf.mxu1 }
 0x2b6   : > { %v914_v25 = vadd.f32 %v913_v22, %v872_v24 }
 0x2b8   : > { %1180 = vmatmul.msk.f32.gmra.mxu0 %vm652_vm2, %v914_v25 }
 0x2bd   : > { %v875_v27 = vpop.f32.mrf.mxu1 }
 0x2be   : > { %v917_v28 = vadd.f32 %v916_v26, %v875_v27 }
 0x2c0   : > { %1181 = vmatmul.msk.f32.gmra.mxu0 %vm652_vm2, %v917_v28 }
 0x2c5   : > { %v1046_v39 = vpop.f32.mrf.mxu1 }
 0x2cd   : > { %v1049_v49 = vpop.f32.mrf.mxu1 }
 0x2d5   : > { %v1052_v1 = vpop.f32.mrf.mxu1 }
 0x2dd   : > { %v1055_v18 = vpop.f32.mrf.mxu1 }
 0x325   : > { %v1005_v44 = vpop.f32.mrf.mxu0 }
 0x326   : > { %v1047_v48 = vadd.f32 %v1046_v39, %v1005_v44 }
 0x328   : > { %v1062_v50 = vadd.f32 %v1220_v0, %v1047_v48 }
 0x32a   : > { %1237 = vtanh.f32 %v1062_v50 }
 0x32d   : > { %v1008_v56 = vpop.f32.mrf.mxu0 }
 0x32e   : > { %v1050_v59 = vadd.f32 %v1049_v49, %v1008_v56 }
 0x330   : > { %v1238_v61 = vpop.eup %1237  ;;  %v1063_v62 = vadd.f32 %v1220_v0, %v1050_v59 }
 0x331   : > { %v1074_v3 = vmul.f32 %v1238_v61, %v1072_v60 }
 0x332   : > { %1239 = vtanh.f32 %v1063_v62 }
 0x333   : > { %v1076_v8 = vadd.f32 %v1074_v3, %v1070_v2 }
 0x335   : > { %v1011_v10 = vpop.f32.mrf.mxu0  ;;  %1090 = vst.msk [vmem:[#allocation2] sm:$0xff] %vm652_vm2, %v1076_v8  ;;  %v1097_v11 = vadd.f32 %v1095_v7, %v1076_v8 }
 0x336   : > { %v1053_v12 = vadd.f32 %v1052_v1, %v1011_v10 }
 0x337   : > { %1099 = vst.msk [vmem:[%s1622_s14] sm:$0xff] %vm652_vm2, %v1097_v11 }
 0x338   : > { %v1240_v13 = vpop.eup %1239  ;;  %v1064_v14 = vadd.f32 %v1220_v0, %v1053_v12 }
 0x339   : > { %v1075_v16 = vmul.f32 %v1240_v13, %v1073_v6 }
 0x33a   : > { %1241 = vtanh.f32 %v1064_v14 }
 0x33b   : > { %v1077_v19 = vadd.f32 %v1075_v16, %v1071_v15 }
 0x33d   : > { %v1014_v20 = vpop.f32.mrf.mxu0  ;;  %1091 = vst.msk [vmem:[#allocation2 + $0x8] sm:$0xff] %vm652_vm2, %v1077_v19  ;;  %v1098_v21 = vadd.f32 %v1096_v17, %v1077_v19 }
 0x33e   : > { %v1056_v22 = vadd.f32 %v1055_v18, %v1014_v20  ;;  %v1101_v29 = vld [vmem:[%s1622_s14] sm:$0xff] }
 0x33f   : > { %1100 = vst.msk [vmem:[%s1622_s14 + $0x8] sm:$0xff] %vm652_vm2, %v1098_v21 }
 0x340   : > { %v1242_v24 = vpop.eup %1241  ;;  %v1065_v5 = vadd.f32 %v1220_v0, %v1056_v22 }
 0x341   : > { %1080 = vrot.lane.b32.xlu0 %v1242_v24, %s1255_s15 }
 0x342   : > { %1243 = vtanh.f32 %v1065_v5 }
 0x346   : > { %v1102_v34 = vld [vmem:[%s1622_s14 + $0x8] sm:$0xff] }
 0x348   : > { %v1244_v25 = vpop.eup %1243 }
 0x349   : > { %1082 = vrot.lane.b32.xlu1 %v1244_v25, %s1255_s15 }
 0x3b3   : > { %v1081_v26 = vpop.permute.xlu0 %1080 }
 0x3b4   : > { %v1086_v27 = vmul.f32 %v1081_v26, %v1072_v60 }
 0x3b6   : > { %v1088_v28 = vadd.f32 %v1086_v27, %v1070_v2 }
 0x3b8   : > { %1093 = vst.msk [vmem:[#allocation2] sm:$0xff] %vm1092_vm4, %v1088_v28  ;;  %v1103_v30 = vadd.f32 %v1101_v29, %v1088_v28 }
 0x3ba   : > { %1105 = vst.msk [vmem:[%s1622_s14] sm:$0xff] %vm1092_vm4, %v1103_v30 }
 0x3bb   : > { %v1083_v31 = vpop.permute.xlu1 %1082 }
 0x3bc   : > { %v1087_v32 = vmul.f32 %v1083_v31, %v1073_v6 }
 0x3be   : > { %v1089_v33 = vadd.f32 %v1087_v32, %v1071_v15 }
 0x3c0   : > { %1094 = vst.msk [vmem:[#allocation2 + $0x8] sm:$0xff] %vm1092_vm4, %v1089_v33  ;;  %v1104_v35 = vadd.f32 %v1102_v34, %v1089_v33 }
 0x3c2   : > { %1106 = vst.msk [vmem:[%s1622_s14 + $0x8] sm:$0xff] %vm1092_vm4, %v1104_v35 }
 0x3c3 PF: > { %s24_s29 = sadd.s32 1, %s1251_s29  }
 0x3c4   : > { %p21_p5 = scmp.ge.s32.totalorder %s24_s29, 6  }
 0x3c6   :  { %23 = sbr.rel (!%p21_p5) target bundleno = 1 (0x1), region = 106 }

</bundles_post_ra>
